<compile_context>
chip_gen: v7x
topology: tpu7x:2x2x1
jax: 0.10.0
libtpu: 0.0.40
codegen_flags: <defaults>
</compile_context>

<pallas_src>
import functools

import jax
import jax.numpy as jnp
from jax import lax
from jax.experimental import pallas as pl
from jax.experimental.pallas import tpu as pltpu

_EPS = 1e-12            # torch.nn.functional.normalize default eps
_EPS_SQ = _EPS * _EPS   # clamp on the sum of squares == clamp on the norm


def _normed_linear_kernel(x_ref, w_ref, o_ref, acc_ref, xsq_ref, wsq_ref):
    k = pl.program_id(2)

    @pl.when(k == 0)
    def _init():
        acc_ref[...] = jnp.zeros_like(acc_ref)
        xsq_ref[...] = jnp.zeros_like(xsq_ref)
        wsq_ref[...] = jnp.zeros_like(wsq_ref)

    x = x_ref[...]            # (tm, tk), native dtype
    w = w_ref[...]            # (tn, tk), native dtype

    # Raw (un-normalized) partial product on the MXU, contracting in_features
    # of both operands directly (no transpose of the weight tile).
    acc_ref[...] += lax.dot_general(
        x, w,
        dimension_numbers=(((1,), (1,)), ((), ())),
        preferred_element_type=jnp.float32)

    # Partial row sums-of-squares, reduced on the MXU with a ones vector so
    # results land directly in the layouts needed for the final broadcast.
    xf = x.astype(jnp.float32)
    wf = w.astype(jnp.float32)
    ones_k = jnp.ones((1, x.shape[1]), dtype=jnp.float32)
    xsq_ref[...] += lax.dot_general(              # (tm, 1)
        xf * xf, ones_k,
        dimension_numbers=(((1,), (1,)), ((), ())),
        preferred_element_type=jnp.float32)
    wsq_ref[...] += lax.dot_general(              # (1, tn)
        ones_k, wf * wf,
        dimension_numbers=(((1,), (1,)), ((), ())),
        preferred_element_type=jnp.float32)

    @pl.when(k == pl.num_programs(2) - 1)
    def _finalize():
        x_inv = lax.rsqrt(jnp.maximum(xsq_ref[...], _EPS_SQ))   # (tm, 1)
        w_inv = lax.rsqrt(jnp.maximum(wsq_ref[...], _EPS_SQ))   # (1, tn)
        o_ref[...] = (acc_ref[...] * x_inv * w_inv).astype(o_ref.dtype)


def _round_up(v, m):
    return ((v + m - 1) // m) * m


@functools.partial(jax.jit, static_argnames=("tm", "tn", "tk"))
def normed_linear(x, weight, *, tm=256, tn=256, tk=512):
    """cosine = normalize(x, dim=1) @ normalize(weight, dim=1).T"""
    n, k_in = x.shape
    f_out, k_w = weight.shape
    assert k_in == k_w, "in_features mismatch"

    # Clamp tile sizes to the (alignment-padded) problem size.
    tm = min(tm, _round_up(n, 8))
    tn = min(tn, _round_up(f_out, 128))
    tk = min(tk, _round_up(k_in, 128))

    n_p = _round_up(n, tm)
    f_p = _round_up(f_out, tn)
    k_p = _round_up(k_in, tk)

    x_p = x
    if (n_p, k_p) != (n, k_in):
        x_p = jnp.pad(x, ((0, n_p - n), (0, k_p - k_in)))
    w_p = weight
    if (f_p, k_p) != (f_out, k_in):
        w_p = jnp.pad(weight, ((0, f_p - f_out), (0, k_p - k_in)))

    grid = (n_p // tm, f_p // tn, k_p // tk)

    out = pl.pallas_call(
        _normed_linear_kernel,
        out_shape=jax.ShapeDtypeStruct((n_p, f_p), x.dtype),
        grid_spec=pltpu.PrefetchScalarGridSpec(
            num_scalar_prefetch=0,
            grid=grid,
            in_specs=[
                pl.BlockSpec((tm, tk), lambda i, j, kk: (i, kk)),
                pl.BlockSpec((tn, tk), lambda i, j, kk: (j, kk)),
            ],
            out_specs=pl.BlockSpec((tm, tn), lambda i, j, kk: (i, j)),
            scratch_shapes=[
                pltpu.VMEM((tm, tn), jnp.float32),   # f32 accumulator
                pltpu.VMEM((tm, 1), jnp.float32),    # x row sum-of-squares
                pltpu.VMEM((1, tn), jnp.float32),    # w row sum-of-squares
            ],
        ),
        compiler_params=pltpu.CompilerParams(
            dimension_semantics=("parallel", "parallel", "arbitrary")),
    )(x_p, w_p)

    return out[:n, :f_out]


def init_normed_linear_weight(key, in_features, out_features):
    """Reproduces: weight.uniform_(-1, 1).renorm_(2, 1, 1e-05).mul_(100000.0)"""
    w = jax.random.uniform(key, (out_features, in_features),
                           dtype=jnp.float32, minval=-1.0, maxval=1.0)
    col_norm = jnp.sqrt(jnp.sum(w * w, axis=0, keepdims=True))
    maxnorm = 1e-5
    scale = jnp.where(col_norm > maxnorm, maxnorm / (col_norm + 1e-7), 1.0)
    return w * scale * 100000.0


def _reference(x, w):
    xh = x / jnp.maximum(jnp.linalg.norm(x, axis=1, keepdims=True), _EPS)
    wh = w / jnp.maximum(jnp.linalg.norm(w, axis=1, keepdims=True), _EPS)
    return xh @ wh.T


if __name__ == "__main__":
    key = jax.random.PRNGKey(0)
    k1, k2, k3, k4 = jax.random.split(key, 4)

    # Case 1: tiny shapes matching the module's typical use
    # (single grid step after alignment padding; exercises the padding path).
    n1, fin1, fout1 = 8, 32, 16
    x1 = jax.random.normal(k1, (n1, fin1), dtype=jnp.float32)
    w1 = init_normed_linear_weight(k2, fin1, fout1)
    out1 = jax.block_until_ready(normed_linear(x1, w1))
    ref1 = _reference(x1, w1)
    assert out1.shape == (n1, fout1)
    assert jnp.allclose(out1, ref1, atol=1e-4, rtol=1e-4), "case 1 mismatch"

    # Case 2: small multi-tile problem (grid = (2, 2, 2)) exercising the
    # K-axis accumulation, init/finalize gating and M/N parallel tiling.
    n2, fin2, fout2 = 64, 256, 256
    x2 = jax.random.normal(k3, (n2, fin2), dtype=jnp.float32)
    w2 = init_normed_linear_weight(k4, fin2, fout2)
    out2 = jax.block_until_ready(normed_linear(x2, w2, tm=32, tn=128, tk=128))
    ref2 = _reference(x2, w2)
    assert out2.shape == (n2, fout2)
    assert jnp.allclose(out2, ref2, atol=1e-4, rtol=1e-4), "case 2 mismatch"

    print("KERNEL_OK")
</pallas_src>

<mosaic_0001>
module attributes {stable_mosaic.version = 11 : i64} {
  func.func @_normed_linear_kernel(%arg0: i32, %arg1: i32, %arg2: i32, %arg3: memref<8x128xf32, #tpu.memory_space<vmem>>, %arg4: memref<128x128xf32, #tpu.memory_space<vmem>>, %arg5: memref<8x128xf32, #tpu.memory_space<vmem>>, %arg6: memref<8x128xf32, #tpu.memory_space<vmem>>, %arg7: memref<8x1xf32, #tpu.memory_space<vmem>>, %arg8: memref<1x128xf32, #tpu.memory_space<vmem>>) attributes {dimension_semantics = [#tpu.dimension_semantics<parallel>, #tpu.dimension_semantics<parallel>, #tpu.dimension_semantics<arbitrary>], iteration_bounds = array<i64: 1, 1, 1>, scalar_prefetch = 0 : i64, scratch_operands = 3 : i64, tpu.core_type = #tpu.core_type<tc>, window_params = [{transform_indices = @transform_0, window_bounds = array<i64: 8, 128>}, {transform_indices = @transform_1, window_bounds = array<i64: 128, 128>}, {transform_indices = @transform_2, window_bounds = array<i64: 8, 128>}]} {
    %c0_i32 = arith.constant 0 : i32
    %0 = arith.cmpi eq, %arg2, %c0_i32 : i32
    %1 = arith.extui %0 : i1 to i32
    %c0_i32_0 = arith.constant 0 : i32
    %2 = arith.cmpi ne, %1, %c0_i32_0 : i32
    scf.if %2 {
      %cst_21 = arith.constant 0.000000e+00 : f32
      %23 = vector.broadcast %cst_21 : f32 to vector<8x128xf32>
      %c0_22 = arith.constant 0 : index
      %c0_23 = arith.constant 0 : index
      %24 = vector.load %arg6[%c0_22, %c0_23] : memref<8x128xf32, #tpu.memory_space<vmem>>, vector<8x128xf32>
      tpu.vector_store %arg6[%c0_22, %c0_23], %23 {strides = array<i32>} : memref<8x128xf32, #tpu.memory_space<vmem>>, vector<8x128xf32>,
      %cst_24 = arith.constant 0.000000e+00 : f32
      %25 = vector.broadcast %cst_24 : f32 to vector<8x1xf32>
      %c0_25 = arith.constant 0 : index
      %c0_26 = arith.constant 0 : index
      %26 = vector.load %arg7[%c0_25, %c0_26] : memref<8x1xf32, #tpu.memory_space<vmem>>, vector<8x1xf32>
      tpu.vector_store %arg7[%c0_25, %c0_26], %25 {strides = array<i32>} : memref<8x1xf32, #tpu.memory_space<vmem>>, vector<8x1xf32>,
      %cst_27 = arith.constant 0.000000e+00 : f32
      %27 = vector.broadcast %cst_27 : f32 to vector<1x128xf32>
      %c0_28 = arith.constant 0 : index
      %c0_29 = arith.constant 0 : index
      %28 = vector.load %arg8[%c0_28, %c0_29] : memref<1x128xf32, #tpu.memory_space<vmem>>, vector<1x128xf32>
      tpu.vector_store %arg8[%c0_28, %c0_29], %27 {strides = array<i32>} : memref<1x128xf32, #tpu.memory_space<vmem>>, vector<1x128xf32>,
    } else {
    }
    %c0 = arith.constant 0 : index
    %c0_1 = arith.constant 0 : index
    %3 = vector.load %arg3[%c0, %c0_1] : memref<8x128xf32, #tpu.memory_space<vmem>>, vector<8x128xf32>
    %c0_2 = arith.constant 0 : index
    %c0_3 = arith.constant 0 : index
    %4 = vector.load %arg4[%c0_2, %c0_3] : memref<128x128xf32, #tpu.memory_space<vmem>>, vector<128x128xf32>
    %c0_4 = arith.constant 0 : index
    %c0_5 = arith.constant 0 : index
    %5 = vector.load %arg6[%c0_4, %c0_5] : memref<8x128xf32, #tpu.memory_space<vmem>>, vector<8x128xf32>
    %cst = arith.constant dense<0.000000e+00> : vector<8x128xf32>
    %6 = tpu.matmul %3, %4, %cst {dimension_numbers = #tpu.dot_dimension_numbers<[1], [1], [0], [0], [0, 0, 1, 0], [], []>} : vector<8x128xf32>, vector<128x128xf32>, vector<8x128xf32> -> vector<8x128xf32>
    %7 = arith.addf %5, %6 : vector<8x128xf32>
    %c0_6 = arith.constant 0 : index
    %c0_7 = arith.constant 0 : index
    %8 = vector.load %arg6[%c0_6, %c0_7] : memref<8x128xf32, #tpu.memory_space<vmem>>, vector<8x128xf32>
    tpu.vector_store %arg6[%c0_6, %c0_7], %7 {strides = array<i32>} : memref<8x128xf32, #tpu.memory_space<vmem>>, vector<8x128xf32>,
    %cst_8 = arith.constant 1.000000e+00 : f32
    %9 = vector.broadcast %cst_8 : f32 to vector<1x128xf32>
    %c0_9 = arith.constant 0 : index
    %c0_10 = arith.constant 0 : index
    %10 = vector.load %arg7[%c0_9, %c0_10] : memref<8x1xf32, #tpu.memory_space<vmem>>, vector<8x1xf32>
    %11 = arith.mulf %3, %3 : vector<8x128xf32>
    %cst_11 = arith.constant dense<0.000000e+00> : vector<8x1xf32>
    %12 = tpu.matmul %11, %9, %cst_11 {dimension_numbers = #tpu.dot_dimension_numbers<[1], [1], [0], [0], [0, 0, 1, 0], [], []>} : vector<8x128xf32>, vector<1x128xf32>, vector<8x1xf32> -> vector<8x1xf32>
    %13 = arith.addf %10, %12 : vector<8x1xf32>
    %c0_12 = arith.constant 0 : index
    %c0_13 = arith.constant 0 : index
    %14 = vector.load %arg7[%c0_12, %c0_13] : memref<8x1xf32, #tpu.memory_space<vmem>>, vector<8x1xf32>
    tpu.vector_store %arg7[%c0_12, %c0_13], %13 {strides = array<i32>} : memref<8x1xf32, #tpu.memory_space<vmem>>, vector<8x1xf32>,
    %c0_14 = arith.constant 0 : index
    %c0_15 = arith.constant 0 : index
    %15 = vector.load %arg8[%c0_14, %c0_15] : memref<1x128xf32, #tpu.memory_space<vmem>>, vector<1x128xf32>
    %16 = arith.mulf %4, %4 : vector<128x128xf32>
    %cst_16 = arith.constant dense<0.000000e+00> : vector<1x128xf32>
    %17 = tpu.matmul %9, %16, %cst_16 {dimension_numbers = #tpu.dot_dimension_numbers<[1], [1], [0], [0], [0, 0, 1, 0], [], []>} : vector<1x128xf32>, vector<128x128xf32>, vector<1x128xf32> -> vector<1x128xf32>
    %18 = arith.addf %15, %17 : vector<1x128xf32>
    %c0_17 = arith.constant 0 : index
    %c0_18 = arith.constant 0 : index
    %19 = vector.load %arg8[%c0_17, %c0_18] : memref<1x128xf32, #tpu.memory_space<vmem>>, vector<1x128xf32>
    tpu.vector_store %arg8[%c0_17, %c0_18], %18 {strides = array<i32>} : memref<1x128xf32, #tpu.memory_space<vmem>>, vector<1x128xf32>,
    %c0_i32_19 = arith.constant 0 : i32
    %20 = arith.cmpi eq, %arg2, %c0_i32_19 : i32
    %21 = arith.extui %20 : i1 to i32
    %c0_i32_20 = arith.constant 0 : i32
    %22 = arith.cmpi ne, %21, %c0_i32_20 : i32
    scf.if %22 {
      %c0_21 = arith.constant 0 : index
      %c0_22 = arith.constant 0 : index
      %23 = vector.load %arg7[%c0_21, %c0_22] : memref<8x1xf32, #tpu.memory_space<vmem>>, vector<8x1xf32>
      %cst_23 = arith.constant 1.000000e-24 : f32
      %24 = vector.broadcast %cst_23 : f32 to vector<8x1xf32>
      %25 = arith.maximumf %23, %24 : vector<8x1xf32>
      %26 = math.rsqrt %25 : vector<8x1xf32>
      %c0_24 = arith.constant 0 : index
      %c0_25 = arith.constant 0 : index
      %27 = vector.load %arg8[%c0_24, %c0_25] : memref<1x128xf32, #tpu.memory_space<vmem>>, vector<1x128xf32>
      %cst_26 = arith.constant 1.000000e-24 : f32
      %28 = vector.broadcast %cst_26 : f32 to vector<1x128xf32>
      %29 = arith.maximumf %27, %28 : vector<1x128xf32>
      %30 = math.rsqrt %29 : vector<1x128xf32>
      %c0_27 = arith.constant 0 : index
      %c0_28 = arith.constant 0 : index
      %31 = vector.load %arg6[%c0_27, %c0_28] : memref<8x128xf32, #tpu.memory_space<vmem>>, vector<8x128xf32>
      %32 = vector.broadcast %26 : vector<8x1xf32> to vector<8x128xf32>
      %33 = arith.mulf %31, %32 : vector<8x128xf32>
      %34 = vector.broadcast %30 : vector<1x128xf32> to vector<8x128xf32>
      %35 = arith.mulf %33, %34 : vector<8x128xf32>
      %c0_29 = arith.constant 0 : index
      %c0_30 = arith.constant 0 : index
      %36 = vector.load %arg5[%c0_29, %c0_30] : memref<8x128xf32, #tpu.memory_space<vmem>>, vector<8x128xf32>
      tpu.vector_store %arg5[%c0_29, %c0_30], %35 {strides = array<i32>} : memref<8x128xf32, #tpu.memory_space<vmem>>, vector<8x128xf32>,
    } else {
    }
    return
  }
  func.func @transform_0(%arg0: i32, %arg1: i32, %arg2: i32) -> (i32, i32) {
    %c0_i32 = arith.constant 0 : i32
    return %arg0, %arg2 : i32, i32
  }
  func.func @transform_1(%arg0: i32, %arg1: i32, %arg2: i32) -> (i32, i32) {
    %c0_i32 = arith.constant 0 : i32
    return %arg1, %arg2 : i32, i32
  }
  func.func @transform_2(%arg0: i32, %arg1: i32, %arg2: i32) -> (i32, i32) {
    %c0_i32 = arith.constant 0 : i32
    return %arg0, %arg1 : i32, i32
  }
}

</mosaic_0001>

<bundles_post_ra>
// kernel: normed_linear.1
= control target key start
LH: loop header
LB: loop body
LE: loop exit
PB: predicated region body
PF: predicated region fallthrough
CT: control target
= control target key end

     0   :  { %vm17_vm0 = vcmask 7168   ;;  %v431_v3 = vmov 0.0|0.0   ;;  %v432_v7 = vmov 0.0   ;;  %vm433_vm1 = vmmov 0   ;;  %s538_s0 = inlined_call_operand.vmem [shape: f32[8,128], index: 0, kind: input, shape index: {}]   ;;  %s539_s1 = inlined_call_operand.vmem [shape: f32[128,128], index: 1, kind: input, shape index: {}]   ;;  %s540_s2 = inlined_call_operand.hbm [shape: f32[8,128], index: 2, kind: output, shape index: {}]  }
   0x1   :  { %v21_v0 = vld [vmem:[%s539_s1] sm:$0xff]  ;;  %v22_v1 = vld [vmem:[%s539_s1 + $0x8] sm:$0xff]  ;;  %372 = vmatprep.subr.bf16.mxu1 %v431_v3  ;;  %348 = vmatprep.subr.bf16.mxu0 %v431_v3  ;;  %18 = vst.msk [vmem:[#allocation3] sm:$0xff] %vm17_vm0, %v432_v7  ;;  %19 = vst [vmem:[#allocation4] sm:$0x1] %v432_v7 }
   0x2   :  { %v461_v2 = vld [vmem:[%s538_s0] sm:$0xff]  ;;  %v118_v4 = vmul.f32 %v21_v0, %v21_v0  ;;  %v119_v5 = vmul.f32 %v22_v1, %v22_v1  ;;  %v23_v8 = vld [vmem:[%s539_s1 + $0x10] sm:$0xff]  ;;  %v24_v9 = vld [vmem:[%s539_s1 + $0x18] sm:$0xff]  ;;  %v349_v10 = vpack.c.bf16 %v22_v1, %v21_v0  ;;  %345 = vmatprep.mubr.msk.f32.mxu1 %vm433_vm1, %v432_v7 }
   0x3   :  { %v111_v6 = vmul.f32 %v461_v2, %v461_v2  ;;  %v120_v12 = vmul.f32 %v23_v8, %v23_v8  ;;  %v121_v13 = vmul.f32 %v24_v9, %v24_v9 }
   0x4   :  { %v373_v11 = vpack.c.bf16 %v119_v5, %v118_v4  ;;  %350 = vmatpush3.bf16.xpose.msra.mxu0 %v349_v10 }
   0x5   :  { %112 = vadd.xlane.f32.xlu0 %v111_v6  ;;  %351 = vmatprep.subr.bf16.mxu0 %v431_v3 }
   0x6   :  { %374 = vmatpush3.bf16.xpose.msra.mxu1 %v373_v11 }
   0x7   :  { %7 = vsyncpa [#allocation6], 0  ;;  %375 = vmatprep.subr.bf16.mxu1 %v431_v3  ;;  %310 = vmatprep.mubr.msk.f32.mxu0 %vm433_vm1, %v432_v7  ;;  %v352_v14 = vpack.c.bf16 %v24_v9, %v23_v8  ;;  %v376_v15 = vpack.c.bf16 %v121_v13, %v120_v12  ;;  %v25_v16 = vld [vmem:[%s539_s1 + $0x20] sm:$0xff]  ;;  %v26_v17 = vld [vmem:[%s539_s1 + $0x28] sm:$0xff]  ;;  %v434_v24 = vmov 0   ;;  %v435_v53 = vmov 1.0  }
   0x8   :  { %v122_v18 = vmul.f32 %v25_v16, %v25_v16  ;;  %v123_v19 = vmul.f32 %v26_v17, %v26_v17  ;;  %v355_v20 = vpack.c.bf16 %v26_v17, %v25_v16  ;;  %v27_v22 = vld [vmem:[%s539_s1 + $0x30] sm:$0xff]  ;;  %v28_v23 = vld [vmem:[%s539_s1 + $0x38] sm:$0xff]  ;;  %402 = vset.pattern.permute.xlu0 %v434_v24  ;;  %v29_v29 = vld [vmem:[%s539_s1 + $0x40] sm:$0xff]  ;;  %v223_v4 = vlaneseq }
   0x9   :  { %v124_v25 = vmul.f32 %v27_v22, %v27_v22  ;;  %v125_v26 = vmul.f32 %v28_v23, %v28_v23  ;;  %v358_v27 = vpack.c.bf16 %v28_v23, %v27_v22  ;;  %v30_v30 = vld [vmem:[%s539_s1 + $0x48] sm:$0xff]  ;;  %v126_v31 = vmul.f32 %v29_v29, %v29_v29  ;;  %v31_v35 = vld [vmem:[%s539_s1 + $0x50] sm:$0xff]  ;;  %v32_v36 = vld [vmem:[%s539_s1 + $0x58] sm:$0xff] }
   0xa   :  { %v379_v21 = vpack.c.bf16 %v123_v19, %v122_v18  ;;  %v127_v32 = vmul.f32 %v30_v30, %v30_v30  ;;  %v361_v33 = vpack.c.bf16 %v30_v30, %v29_v29  ;;  %v128_v37 = vmul.f32 %v31_v35, %v31_v35  ;;  %v33_v41 = vld [vmem:[%s539_s1 + $0x60] sm:$0xff]  ;;  %v34_v42 = vld [vmem:[%s539_s1 + $0x68] sm:$0xff]  ;;  %v35_v47 = vld [vmem:[%s539_s1 + $0x70] sm:$0xff] }
   0xb   :  { %v382_v28 = vpack.c.bf16 %v125_v26, %v124_v25  ;;  %v129_v38 = vmul.f32 %v32_v36, %v32_v36  ;;  %v364_v39 = vpack.c.bf16 %v32_v36, %v31_v35  ;;  %v130_v43 = vmul.f32 %v33_v41, %v33_v41  ;;  %v36_v48 = vld [vmem:[%s539_s1 + $0x78] sm:$0xff]  ;;  %v110_v54 = vld [vmem:[#allocation3] sm:$0xff]  ;;  %v117_v60 = vld [vmem:[#allocation4] sm:$0x1]  ;;  %s436_s1 = smov [#allocation5]  }
   0xc   :  { %353 = vmatpush3.bf16.xpose.msra.mxu0 %v352_v14  ;;  %v385_v34 = vpack.c.bf16 %v127_v32, %v126_v31  ;;  %v131_v44 = vmul.f32 %v34_v42, %v34_v42  ;;  %v367_v45 = vpack.c.bf16 %v34_v42, %v33_v41  ;;  %v132_v49 = vmul.f32 %v35_v47, %v35_v47  ;;  %s236_s14 = sshll.u32 %s436_s1, 4  ;;  %s237_s14 = int_to_ptr.vmem [resolvable:$true] %s236_s14 }
   0xd   :  { %354 = vmatprep.subr.bf16.mxu0 %v431_v3  ;;  %v388_v40 = vpack.c.bf16 %v129_v38, %v128_v37  ;;  %v133_v50 = vmul.f32 %v36_v48, %v36_v48  ;;  %v370_v51 = vpack.c.bf16 %v36_v48, %v35_v47  ;;  %v224_v5 = vshrl.u32 %v223_v4, 7  ;;  %s407_s15 = scalar_lea.vmem %s237_s14, 128  ;;  %p412_p1 = scmp.lt.s32.totalorder %s237_s14, %s237_s14 }
   0xe   :  { %377 = vmatpush3.bf16.xpose.msra.mxu1 %v376_v15  ;;  %v391_v46 = vpack.c.bf16 %v131_v44, %v130_v43  ;;  %p408_p0 = scmp.ne.s32.totalorder %s237_s14, %s407_s15  ;;  %p413_p2 = scmp.lt.s32.totalorder %s407_s15, %s407_s15 }
   0xf   :  { %378 = vmatprep.subr.bf16.mxu1 %v431_v3  ;;  %v394_v52 = vpack.c.bf16 %v133_v50, %v132_v49  ;;  %v225_v7 = vsub.s32 0, %v224_v5 }
  0x10   :  { %p414_p3 = por %p413_p2, %p412_p1 }
  0x12   :  { %p415_p4 = pnand %p414_p3, %p408_p0 }
  0x14   :  { %356 = vmatpush3.bf16.xpose.msra.mxu0 %v355_v20 }
  0x15   :  { %357 = vmatprep.subr.bf16.mxu0 %v431_v3 }
  0x16   :  { %380 = vmatpush3.bf16.xpose.msra.mxu1 %v379_v21 }
  0x17   :  { %381 = vmatprep.subr.bf16.mxu1 %v431_v3 }
  0x1c   :  { %359 = vmatpush3.bf16.xpose.msra.mxu0 %v358_v27 }
  0x1d   :  { %360 = vmatprep.subr.bf16.mxu0 %v431_v3 }
  0x1e   :  { %383 = vmatpush3.bf16.xpose.msra.mxu1 %v382_v28 }
  0x1f   :  { %384 = vmatprep.subr.bf16.mxu1 %v431_v3 }
  0x24   :  { %362 = vmatpush3.bf16.xpose.msra.mxu0 %v361_v33 }
  0x25   :  { %363 = vmatprep.subr.bf16.mxu0 %v431_v3 }
  0x26   :  { %386 = vmatpush3.bf16.xpose.msra.mxu1 %v385_v34 }
  0x27   :  { %387 = vmatprep.subr.bf16.mxu1 %v431_v3 }
  0x2c   :  { %365 = vmatpush3.bf16.xpose.msra.mxu0 %v364_v39 }
  0x2d   :  { %366 = vmatprep.subr.bf16.mxu0 %v431_v3 }
  0x2e   :  { %389 = vmatpush3.bf16.xpose.msra.mxu1 %v388_v40 }
  0x2f   :  { %390 = vmatprep.subr.bf16.mxu1 %v431_v3 }
  0x34   :  { %368 = vmatpush3.bf16.xpose.msra.mxu0 %v367_v45 }
  0x35   :  { %369 = vmatprep.subr.bf16.mxu0 %v431_v3 }
  0x36   :  { %392 = vmatpush3.bf16.xpose.msra.mxu1 %v391_v46 }
  0x37   :  { %393 = vmatprep.subr.bf16.mxu1 %v431_v3 }
  0x3c   :  { %371 = vmatpush3.bf16.xpose.msra.mxu0 %v370_v51 }
  0x3e   :  { %395 = vmatpush3.bf16.xpose.msra.mxu1 %v394_v52 }
  0x43   :  { %311 = vmatmul.mubr.f32.vlgmr.msra.gmra.mrb[0].mxu0 %v461_v2 }
  0x45   :  { %346 = vmatmul.mubr.f32.vlgmr.msra.gmra.mrb[0].mxu1 %v435_v53 }
  0x92   :  { %v113_v55 = vpop.xlane.xlu0 %112 }
  0x93   :  { %v114_v56 = vadd.f32 %v113_v55, %v110_v54 }
  0x95   :  { %116 = vst.msk [vmem:[#allocation3] sm:$0xff] %vm17_vm0, %v114_v56 }
  0x9c   :  { %v209_v57 = vld [vmem:[#allocation3] sm:$0xff] }
  0x9d   :  { %v210_v58 = vmax.f32 %v209_v57, 1e-24 }
  0x9f   :  { %403 = vrsqrt.f32 %v210_v58 }
  0xa9   :  { %v404_v59 = vpop.eup %403 }
  0xaa   :  { %218 = vperm.xlu0 %402, %v404_v59  }
 0x116   :  { %v104_v61 = vpop.f32.mrb[0].mxu0 }
 0x117   :  { %v312_v63 = vpop.f32.mrb[1].mxu0 }
 0x118   :  { %v200_v62 = vpop.f32.mrb[0].mxu1 }
 0x119   :  { %v204_v0 = vadd.f32 %v200_v62, %v117_v60  ;;  %v347_v1 = vpop.f32.mrb[1].mxu1 }
 0x11b   :  { %205 = vst [vmem:[#allocation4] sm:$0x1] %v204_v0 }
 0x122   :  { %v212_v2 = vld [vmem:[#allocation4] sm:$0x1] }
 0x123   :  { %v213_v3 = vmax.f32 %v212_v2, 1e-24 }
 0x125   :  { %405 = vrsqrt.f32 %v213_v3 }
 0x129   :  { %v219_v6 = vpop.permute.xlu0 %218 }
 0x12a   :  { %v221_v8 = vmul.f32 %v219_v6, %v104_v61 }
 0x12f   :  { %v406_v9 = vpop.eup %405 }
 0x130   :  { %v226_v10 = vrot.slane %v406_v9, %v225_v7 }
 0x132   :  { %v228_v11 = vmul.f32 %v226_v10, %v221_v8 }
 0x134   :  { %229 = vst [vmem:[#allocation5] sm:$0xff] %v228_v11 }
 0x135   :  { %418 = shalt.err (!%p415_p4)
}
 0x136   :  { %s419_s17 = scalar_lea.hbm %s540_s2, 128 }
 0x137   :  { %p420_p5 = scmp.ne.s32.totalorder %s540_s2, %s419_s17  ;;  %p423_p6 = scmp.lt.u32.totalorder %s419_s17, %s540_s2 }
 0x139   :  { %p425_p7 = pnand %p423_p6, %p420_p5 }
 0x13b   :  { %428 = shalt.err (!%p425_p7)
}
 0x13c   :  { %239 = dma.vmem_to_hbm [thread:$0]  %s237_s14, 128, %s540_s2, [#allocation6]  }
 0x13d   :  { %429 = dma.done.wait [#allocation6], 128  }
 0x13e   :  { %430 = vsyncadd [#allocation6], 4294967168 }
 0x13f   :  { %243 = vsyncpa [#allocation6], 1 }

</bundles_post_ra>
